<compile_context>
chip_gen: v6e
topology: v6e:2x2x1
jax: 0.10.0
libtpu: 0.0.40
codegen_flags: <defaults>
</compile_context>

<pallas_src>
import functools

import jax
import jax.numpy as jnp
from jax.experimental import pallas as pl
from jax.experimental.pallas import tpu as pltpu

NEG_SLOPE = 0.01        # F.leaky_relu default
LANE = 128
TM_MAX = 2048           # max batch rows per grid step (fits default scoped VMEM on v5e)
SPLIT_THRESHOLD = 32    # batch rows above which we force >= 2 grid steps


def _round_up(x, m):
    return ((x + m - 1) // m) * m


def _cdiv(a, b):
    return (a + b - 1) // b


def _packing(vector_shape):
    """Return (rows_per, out_cols).

    rows_per : how many batch rows share one 128-lane output row (output packing).
    out_cols : per-batch-row output width the kernel writes (C*L, or C*L zero-padded up
               to a multiple of 128 in the fallback path).
    """
    C, L = vector_shape
    cl = C * L
    if cl % LANE == 0:
        return 1, cl                       # already lane-dense
    if LANE % cl == 0:
        return LANE // cl, cl              # pack LANE//cl batch rows per output row
    return 1, _round_up(cl, LANE)          # fallback: zero-pad columns (sliced outside)


def _leaky_relu(x):
    return jnp.where(x > 0, x, NEG_SLOPE * x)


def vector_decoder_kernel(z_ref, w1_ref, b1_ref, w2_ref, b2_ref, wct_ref, bct_ref,
                          out_ref, *, latent_dim, out_cols, rows_per):
    # z_ref tile: (tm, rows_per * latent_dim) f32 -- rows_per consecutive batch rows per
    # sublane row.  Each of the rows_per chains below decodes one of them and writes its
    # 64-lane slot of the packed output row (static unroll; rows_per is 1 or 2 here).
    z = z_ref[...]
    for r in range(rows_per):
        zr = z[:, r * latent_dim:(r + 1) * latent_dim]
        # layer 1 (fc Linear already folded in): Linear(latent -> 256) + leaky_relu
        h = jnp.dot(zr.astype(jnp.bfloat16), w1_ref[...],
                    preferred_element_type=jnp.float32) + b1_ref[...]
        h = _leaky_relu(h)
        # layer 2: Linear(256 -> 256) + leaky_relu
        h = jnp.dot(h.astype(jnp.bfloat16), w2_ref[...],
                    preferred_element_type=jnp.float32) + b2_ref[...]
        h = _leaky_relu(h)
        # ConvTranspose1d(256 -> C, kernel=L) on a length-1 input == matmul with
        # (256, C*L), NO activation.
        res = jnp.dot(h.astype(jnp.bfloat16), wct_ref[...],
                      preferred_element_type=jnp.float32) + bct_ref[...]
        out_ref[:, r * out_cols:(r + 1) * out_cols] = res.astype(out_ref.dtype)


def prepare_params(params, vector_shape):
    """One-time parameter transform (hoisted out of the per-call path).

    - folds the activation-free fc Linear into the first hidden Linear
    - flattens the ConvTranspose1d weight to (256, C*L); only zero-pads columns in the
      fallback case where C*L neither divides nor is divided by 128
    - casts matmul weights to bf16 for the MXU; biases stay f32 (VPU work in f32)
    """
    C, L = vector_shape
    wfc, bfc, w1, b1, w2, b2, wct, bct = params

    # fold fc (no activation) into layer 1, in f32
    w1_fused = wfc @ w1                      # (latent, 256)
    b1_fused = bfc @ w1 + b1                 # (256,)

    # ConvTranspose1d weight (256, C, L) -> (256, C*L); bias (C,) -> (C*L,) (index c*L+l)
    K = wct.shape[0]
    cl = C * L
    _, out_cols = _packing(vector_shape)
    wct_flat = wct.reshape(K, cl)
    bct_flat = jnp.repeat(bct, L)
    if out_cols != cl:                       # fallback path only
        wct_flat = jnp.pad(wct_flat, ((0, 0), (0, out_cols - cl)))
        bct_flat = jnp.pad(bct_flat, ((0, out_cols - cl),))

    return (
        w1_fused.astype(jnp.bfloat16),
        b1_fused.reshape(1, -1).astype(jnp.float32),
        w2.astype(jnp.bfloat16),
        b2.reshape(1, -1).astype(jnp.float32),
        wct_flat.astype(jnp.bfloat16),
        bct_flat.reshape(1, -1).astype(jnp.float32),
    )


@functools.partial(jax.jit, static_argnames=("vector_shape", "out_dtype"))
def vector_decoder_forward(z, prepped, vector_shape, out_dtype=jnp.float32):
    """z: (B, latent) f32. Returns (B, C, L) in out_dtype with vector_shape == (C, L)."""
    C, L = vector_shape
    w1, b1, w2, b2, wct, bct = prepped
    B, D = z.shape
    cl = C * L
    rows_per, out_cols = _packing(vector_shape)
    lane_width = rows_per * out_cols         # 128 for the packed path

    # Work in "packed rows" (rows_per batch rows per 128-lane output row).
    b_pad = _round_up(B, rows_per)
    bp_total = b_pad // rows_per

    tmp_max = max(1, TM_MAX // rows_per)     # packed rows per grid step upper bound
    if b_pad <= SPLIT_THRESHOLD:
        tmp = bp_total                       # tiny batch: one grid step, no padding
    else:
        # >= 2 grid steps so the z load / output writeback DMAs overlap compute and
        # v7x's two TensorCores both get a share of the batch axis; capped so the f32
        # intermediates + double-buffered I/O stay inside scoped VMEM on every gen.
        tmp = min(tmp_max, _round_up(_cdiv(bp_total, 2), 8))
    bp_pad = _round_up(bp_total, tmp)
    b_pad = bp_pad * rows_per

    zp = z if b_pad == B else jnp.pad(z, ((0, b_pad - B), (0, 0)))
    z2 = zp.reshape(bp_pad, rows_per * D)    # row-major -> free reshape, no copy

    resident = lambda i: (0, 0)   # constant block index: weights stay VMEM-resident
    kernel = functools.partial(vector_decoder_kernel, latent_dim=D,
                               out_cols=out_cols, rows_per=rows_per)
    out_packed = pl.pallas_call(
        kernel,
        out_shape=jax.ShapeDtypeStruct((bp_pad, lane_width), out_dtype),
        grid=(bp_pad // tmp,),
        in_specs=[
            pl.BlockSpec((tmp, rows_per * D), lambda i: (i, 0)),   # streamed activations
            pl.BlockSpec(w1.shape, resident),
            pl.BlockSpec(b1.shape, resident),
            pl.BlockSpec(w2.shape, resident),
            pl.BlockSpec(b2.shape, resident),
            pl.BlockSpec(wct.shape, resident),
            pl.BlockSpec(bct.shape, resident),
        ],
        out_specs=pl.BlockSpec((tmp, lane_width), lambda i: (i, 0)),
        compiler_params=pltpu.CompilerParams(
            dimension_semantics=("parallel",),   # batch axis shards across v7x's 2 TCs
            vmem_limit_bytes=32 * 1024 * 1024,   # headroom for tm=2048; < v7x 64 MiB phys
        ),
    )(z2, w1, b1, w2, b2, wct, bct)

    # Unpack: (bp_pad, rows_per*out_cols) -> (b_pad, out_cols) is a free row-major
    # reshape; slices below only materialize when B needed padding / column fallback.
    out_flat = out_packed.reshape(b_pad, out_cols)
    if b_pad != B:
        out_flat = out_flat[:B]
    if out_cols != cl:
        out_flat = out_flat[:, :cl]
    return out_flat.reshape(B, C, L)


def init_params(key, latent_dim, layers_dim, vector_shape):
    """Deterministic synthetic parameters matching the PyTorch layer shapes.

    PyTorch Linear stores weight (out, in); we generate (in, out) directly since that is
    the layout the matmuls consume (transpose when loading a real state_dict).
    """
    C, L = vector_shape
    ks = jax.random.split(key, 8)
    scale = 0.1
    wfc = scale * jax.random.normal(ks[0], (latent_dim, latent_dim), jnp.float32)
    bfc = scale * jax.random.normal(ks[1], (latent_dim,), jnp.float32)
    w1 = scale * jax.random.normal(ks[2], (latent_dim, layers_dim[0]), jnp.float32)
    b1 = scale * jax.random.normal(ks[3], (layers_dim[0],), jnp.float32)
    w2 = scale * jax.random.normal(ks[4], (layers_dim[0], layers_dim[1]), jnp.float32)
    b2 = scale * jax.random.normal(ks[5], (layers_dim[1],), jnp.float32)
    # ConvTranspose1d weight shape (in_channels, out_channels, kernel) = (layers_dim[0], C, L)
    wct = scale * jax.random.normal(ks[6], (layers_dim[0], C, L), jnp.float32)
    bct = scale * jax.random.normal(ks[7], (C,), jnp.float32)
    return (wfc, bfc, w1, b1, w2, b2, wct, bct)


def reference_forward(z, params, vector_shape):
    """Pure-JAX f32 reference reproducing the PyTorch forward exactly (no fusion)."""
    C, L = vector_shape
    wfc, bfc, w1, b1, w2, b2, wct, bct = params
    h = z @ wfc + bfc                         # fc, no activation
    h = _leaky_relu(h @ w1 + b1)              # hidden 1
    h = _leaky_relu(h @ w2 + b2)              # hidden 2
    # ConvTranspose1d on length-1 input: out[b,c,l] = bias[c] + sum_k h[b,k]*wct[k,c,l]
    out = jnp.einsum('bk,kcl->bcl', h, wct) + bct[None, :, None]
    return out


if __name__ == "__main__":
    batch = 2
    latent_dim = 32
    layers_dim = [256, 256]
    vector_shape = (4, 16)  # (C, L): 2-D vector_shape -> ConvTranspose1d last layer

    key = jax.random.PRNGKey(0)
    kz, kp = jax.random.split(key)
    z = jax.random.normal(kz, (batch, latent_dim), jnp.float32)
    params = init_params(kp, latent_dim, layers_dim, vector_shape)

    prepped = prepare_params(params, vector_shape)          # one-time weight transform
    out = vector_decoder_forward(z, prepped, vector_shape)
    out = jax.block_until_ready(out)

    ref = reference_forward(z, params, vector_shape)
    assert out.shape == (batch, vector_shape[0], vector_shape[1])
    assert jnp.all(jnp.isfinite(out))
    # Tolerance accounts for bf16 MXU inputs + fc-into-layer1 folding vs. the f32 reference.
    assert jnp.allclose(out, ref, atol=5e-2, rtol=5e-2), "Pallas kernel mismatch vs reference"

    print("KERNEL_OK")
</pallas_src>

<mosaic_0001>
module attributes {stable_mosaic.version = 11 : i64} {
  func.func @vector_decoder_kernel(%arg0: i32, %arg1: memref<1x64xf32, #tpu.memory_space<vmem>>, %arg2: memref<32x256xbf16, #tpu.memory_space<vmem>>, %arg3: memref<1x256xf32, #tpu.memory_space<vmem>>, %arg4: memref<256x256xbf16, #tpu.memory_space<vmem>>, %arg5: memref<1x256xf32, #tpu.memory_space<vmem>>, %arg6: memref<256x64xbf16, #tpu.memory_space<vmem>>, %arg7: memref<1x64xf32, #tpu.memory_space<vmem>>, %arg8: memref<1x128xf32, #tpu.memory_space<vmem>>) attributes {dimension_semantics = [#tpu.dimension_semantics<parallel>], iteration_bounds = array<i64: 1>, scalar_prefetch = 0 : i64, scratch_operands = 0 : i64, tpu.core_type = #tpu.core_type<tc>, window_params = [{transform_indices = @transform_0, window_bounds = array<i64: 1, 64>}, {pipeline_mode = #tpu.pipeline_mode<synchronous>, transform_indices = @transform_1, window_bounds = array<i64: 32, 256>}, {pipeline_mode = #tpu.pipeline_mode<synchronous>, transform_indices = @transform_2, window_bounds = array<i64: 1, 256>}, {pipeline_mode = #tpu.pipeline_mode<synchronous>, transform_indices = @transform_3, window_bounds = array<i64: 256, 256>}, {pipeline_mode = #tpu.pipeline_mode<synchronous>, transform_indices = @transform_4, window_bounds = array<i64: 1, 256>}, {pipeline_mode = #tpu.pipeline_mode<synchronous>, transform_indices = @transform_5, window_bounds = array<i64: 256, 64>}, {pipeline_mode = #tpu.pipeline_mode<synchronous>, transform_indices = @transform_6, window_bounds = array<i64: 1, 64>}, {transform_indices = @transform_7, window_bounds = array<i64: 1, 128>}]} {
    %c0 = arith.constant 0 : index
    %c0_0 = arith.constant 0 : index
    %0 = vector.load %arg1[%c0, %c0_0] : memref<1x64xf32, #tpu.memory_space<vmem>>, vector<1x64xf32>
    %1 = vector.extract_strided_slice %0 {offsets = [0, 0], sizes = [1, 32], strides = [1, 1]} : vector<1x64xf32> to vector<1x32xf32>
    %2 = arith.truncf %1 : vector<1x32xf32> to vector<1x32xbf16>
    %c0_1 = arith.constant 0 : index
    %c0_2 = arith.constant 0 : index
    %3 = vector.load %arg2[%c0_1, %c0_2] : memref<32x256xbf16, #tpu.memory_space<vmem>>, vector<32x256xbf16>
    %cst = arith.constant dense<0.000000e+00> : vector<1x256xf32>
    %4 = tpu.matmul %2, %3, %cst {dimension_numbers = #tpu.dot_dimension_numbers<[1], [0], [0], [1], [0, 0, 1, 1], [], []>} : vector<1x32xbf16>, vector<32x256xbf16>, vector<1x256xf32> -> vector<1x256xf32>
    %c0_3 = arith.constant 0 : index
    %c0_4 = arith.constant 0 : index
    %5 = vector.load %arg3[%c0_3, %c0_4] : memref<1x256xf32, #tpu.memory_space<vmem>>, vector<1x256xf32>
    %6 = arith.addf %4, %5 : vector<1x256xf32>
    %cst_5 = arith.constant 0.000000e+00 : f32
    %7 = vector.broadcast %cst_5 : f32 to vector<1x256xf32>
    %8 = arith.cmpf ogt, %6, %7 : vector<1x256xf32>
    %cst_6 = arith.constant 0.00999999977 : f32
    %9 = vector.broadcast %cst_6 : f32 to vector<1x256xf32>
    %10 = arith.mulf %9, %6 : vector<1x256xf32>
    %11 = arith.select %8, %6, %10 : vector<1x256xi1>, vector<1x256xf32>
    %12 = arith.truncf %11 : vector<1x256xf32> to vector<1x256xbf16>
    %c0_7 = arith.constant 0 : index
    %c0_8 = arith.constant 0 : index
    %13 = vector.load %arg4[%c0_7, %c0_8] : memref<256x256xbf16, #tpu.memory_space<vmem>>, vector<256x256xbf16>
    %cst_9 = arith.constant dense<0.000000e+00> : vector<1x256xf32>
    %14 = tpu.matmul %12, %13, %cst_9 {dimension_numbers = #tpu.dot_dimension_numbers<[1], [0], [0], [1], [0, 0, 1, 1], [], []>} : vector<1x256xbf16>, vector<256x256xbf16>, vector<1x256xf32> -> vector<1x256xf32>
    %c0_10 = arith.constant 0 : index
    %c0_11 = arith.constant 0 : index
    %15 = vector.load %arg5[%c0_10, %c0_11] : memref<1x256xf32, #tpu.memory_space<vmem>>, vector<1x256xf32>
    %16 = arith.addf %14, %15 : vector<1x256xf32>
    %cst_12 = arith.constant 0.000000e+00 : f32
    %17 = vector.broadcast %cst_12 : f32 to vector<1x256xf32>
    %18 = arith.cmpf ogt, %16, %17 : vector<1x256xf32>
    %cst_13 = arith.constant 0.00999999977 : f32
    %19 = vector.broadcast %cst_13 : f32 to vector<1x256xf32>
    %20 = arith.mulf %19, %16 : vector<1x256xf32>
    %21 = arith.select %18, %16, %20 : vector<1x256xi1>, vector<1x256xf32>
    %22 = arith.truncf %21 : vector<1x256xf32> to vector<1x256xbf16>
    %c0_14 = arith.constant 0 : index
    %c0_15 = arith.constant 0 : index
    %23 = vector.load %arg6[%c0_14, %c0_15] : memref<256x64xbf16, #tpu.memory_space<vmem>>, vector<256x64xbf16>
    %cst_16 = arith.constant dense<0.000000e+00> : vector<1x64xf32>
    %24 = tpu.matmul %22, %23, %cst_16 {dimension_numbers = #tpu.dot_dimension_numbers<[1], [0], [0], [1], [0, 0, 1, 1], [], []>} : vector<1x256xbf16>, vector<256x64xbf16>, vector<1x64xf32> -> vector<1x64xf32>
    %c0_17 = arith.constant 0 : index
    %c0_18 = arith.constant 0 : index
    %25 = vector.load %arg7[%c0_17, %c0_18] : memref<1x64xf32, #tpu.memory_space<vmem>>, vector<1x64xf32>
    %26 = arith.addf %24, %25 : vector<1x64xf32>
    %c0_19 = arith.constant 0 : index
    %c0_20 = arith.constant 0 : index
    %27 = vector.load %arg8[%c0_19, %c0_20] : memref<1x128xf32, #tpu.memory_space<vmem>>, vector<1x64xf32>
    tpu.vector_store %arg8[%c0_19, %c0_20], %26 {strides = array<i32>} : memref<1x128xf32, #tpu.memory_space<vmem>>, vector<1x64xf32>,
    %28 = vector.extract_strided_slice %0 {offsets = [0, 32], sizes = [1, 32], strides = [1, 1]} : vector<1x64xf32> to vector<1x32xf32>
    %29 = arith.truncf %28 : vector<1x32xf32> to vector<1x32xbf16>
    %c0_21 = arith.constant 0 : index
    %c0_22 = arith.constant 0 : index
    %30 = vector.load %arg2[%c0_21, %c0_22] : memref<32x256xbf16, #tpu.memory_space<vmem>>, vector<32x256xbf16>
    %cst_23 = arith.constant dense<0.000000e+00> : vector<1x256xf32>
    %31 = tpu.matmul %29, %30, %cst_23 {dimension_numbers = #tpu.dot_dimension_numbers<[1], [0], [0], [1], [0, 0, 1, 1], [], []>} : vector<1x32xbf16>, vector<32x256xbf16>, vector<1x256xf32> -> vector<1x256xf32>
    %c0_24 = arith.constant 0 : index
    %c0_25 = arith.constant 0 : index
    %32 = vector.load %arg3[%c0_24, %c0_25] : memref<1x256xf32, #tpu.memory_space<vmem>>, vector<1x256xf32>
    %33 = arith.addf %31, %32 : vector<1x256xf32>
    %cst_26 = arith.constant 0.000000e+00 : f32
    %34 = vector.broadcast %cst_26 : f32 to vector<1x256xf32>
    %35 = arith.cmpf ogt, %33, %34 : vector<1x256xf32>
    %cst_27 = arith.constant 0.00999999977 : f32
    %36 = vector.broadcast %cst_27 : f32 to vector<1x256xf32>
    %37 = arith.mulf %36, %33 : vector<1x256xf32>
    %38 = arith.select %35, %33, %37 : vector<1x256xi1>, vector<1x256xf32>
    %39 = arith.truncf %38 : vector<1x256xf32> to vector<1x256xbf16>
    %c0_28 = arith.constant 0 : index
    %c0_29 = arith.constant 0 : index
    %40 = vector.load %arg4[%c0_28, %c0_29] : memref<256x256xbf16, #tpu.memory_space<vmem>>, vector<256x256xbf16>
    %cst_30 = arith.constant dense<0.000000e+00> : vector<1x256xf32>
    %41 = tpu.matmul %39, %40, %cst_30 {dimension_numbers = #tpu.dot_dimension_numbers<[1], [0], [0], [1], [0, 0, 1, 1], [], []>} : vector<1x256xbf16>, vector<256x256xbf16>, vector<1x256xf32> -> vector<1x256xf32>
    %c0_31 = arith.constant 0 : index
    %c0_32 = arith.constant 0 : index
    %42 = vector.load %arg5[%c0_31, %c0_32] : memref<1x256xf32, #tpu.memory_space<vmem>>, vector<1x256xf32>
    %43 = arith.addf %41, %42 : vector<1x256xf32>
    %cst_33 = arith.constant 0.000000e+00 : f32
    %44 = vector.broadcast %cst_33 : f32 to vector<1x256xf32>
    %45 = arith.cmpf ogt, %43, %44 : vector<1x256xf32>
    %cst_34 = arith.constant 0.00999999977 : f32
    %46 = vector.broadcast %cst_34 : f32 to vector<1x256xf32>
    %47 = arith.mulf %46, %43 : vector<1x256xf32>
    %48 = arith.select %45, %43, %47 : vector<1x256xi1>, vector<1x256xf32>
    %49 = arith.truncf %48 : vector<1x256xf32> to vector<1x256xbf16>
    %c0_35 = arith.constant 0 : index
    %c0_36 = arith.constant 0 : index
    %50 = vector.load %arg6[%c0_35, %c0_36] : memref<256x64xbf16, #tpu.memory_space<vmem>>, vector<256x64xbf16>
    %cst_37 = arith.constant dense<0.000000e+00> : vector<1x64xf32>
    %51 = tpu.matmul %49, %50, %cst_37 {dimension_numbers = #tpu.dot_dimension_numbers<[1], [0], [0], [1], [0, 0, 1, 1], [], []>} : vector<1x256xbf16>, vector<256x64xbf16>, vector<1x64xf32> -> vector<1x64xf32>
    %c0_38 = arith.constant 0 : index
    %c0_39 = arith.constant 0 : index
    %52 = vector.load %arg7[%c0_38, %c0_39] : memref<1x64xf32, #tpu.memory_space<vmem>>, vector<1x64xf32>
    %53 = arith.addf %51, %52 : vector<1x64xf32>
    %c0_40 = arith.constant 0 : index
    %c64 = arith.constant 64 : index
    %54 = vector.load %arg8[%c0_40, %c64] : memref<1x128xf32, #tpu.memory_space<vmem>>, vector<1x64xf32>
    tpu.vector_store %arg8[%c0_40, %c64], %53 {strides = array<i32>} : memref<1x128xf32, #tpu.memory_space<vmem>>, vector<1x64xf32>,
    return
  }
  func.func @transform_0(%arg0: i32) -> (i32, i32) {
    %c0_i32 = arith.constant 0 : i32
    %c0_i32_0 = arith.constant 0 : i32
    return %arg0, %c0_i32 : i32, i32
  }
  func.func @transform_1(%arg0: i32) -> (i32, i32) {
    %c0_i32 = arith.constant 0 : i32
    %c0_i32_0 = arith.constant 0 : i32
    %c0_i32_1 = arith.constant 0 : i32
    return %c0_i32, %c0_i32_0 : i32, i32
  }
  func.func @transform_2(%arg0: i32) -> (i32, i32) {
    %c0_i32 = arith.constant 0 : i32
    %c0_i32_0 = arith.constant 0 : i32
    %c0_i32_1 = arith.constant 0 : i32
    return %c0_i32, %c0_i32_0 : i32, i32
  }
  func.func @transform_3(%arg0: i32) -> (i32, i32) {
    %c0_i32 = arith.constant 0 : i32
    %c0_i32_0 = arith.constant 0 : i32
    %c0_i32_1 = arith.constant 0 : i32
    return %c0_i32, %c0_i32_0 : i32, i32
  }
  func.func @transform_4(%arg0: i32) -> (i32, i32) {
    %c0_i32 = arith.constant 0 : i32
    %c0_i32_0 = arith.constant 0 : i32
    %c0_i32_1 = arith.constant 0 : i32
    return %c0_i32, %c0_i32_0 : i32, i32
  }
  func.func @transform_5(%arg0: i32) -> (i32, i32) {
    %c0_i32 = arith.constant 0 : i32
    %c0_i32_0 = arith.constant 0 : i32
    %c0_i32_1 = arith.constant 0 : i32
    return %c0_i32, %c0_i32_0 : i32, i32
  }
  func.func @transform_6(%arg0: i32) -> (i32, i32) {
    %c0_i32 = arith.constant 0 : i32
    %c0_i32_0 = arith.constant 0 : i32
    %c0_i32_1 = arith.constant 0 : i32
    return %c0_i32, %c0_i32_0 : i32, i32
  }
  func.func @transform_7(%arg0: i32) -> (i32, i32) {
    %c0_i32 = arith.constant 0 : i32
    %c0_i32_0 = arith.constant 0 : i32
    return %arg0, %c0_i32 : i32, i32
  }
}

</mosaic_0001>

<bundles_post_ra>
// kernel: vector_decoder_forward.1
= control target key start
LH: loop header
LB: loop body
LE: loop exit
PB: predicated region body
PF: predicated region fallthrough
CT: control target
= control target key end

     0   :  { %12 = vsyncpa [#allocation3], 0  ;;  %s1344_s24 = smov [#allocation2]   ;;  %s1692_s0 = inlined_call_operand.vmem [shape: f32[1,64], index: 0, kind: input, shape index: {}]   ;;  %s1693_s1 = inlined_call_operand.vmem [shape: bf16[32,256], index: 1, kind: input, shape index: {}]   ;;  %s1694_s2 = inlined_call_operand.vmem [shape: f32[1,256], index: 2, kind: input, shape index: {}]   ;;  %s1695_s3 = inlined_call_operand.hbm [shape: bf16[256,256], index: 3, kind: input, shape index: {}]   ;;  %s1696_s4 = inlined_call_operand.vmem [shape: f32[1,256], index: 4, kind: input, shape index: {}]   ;;  %s1697_s5 = inlined_call_operand.vmem [shape: bf16[256,64], index: 5, kind: input, shape index: {}]   ;;  %s1698_s6 = inlined_call_operand.vmem [shape: f32[1,64], index: 6, kind: input, shape index: {}]   ;;  %s1699_s7 = inlined_call_operand.vmem [shape: f32[1,128], index: 7, kind: output, shape index: {}]  }
   0x1   :  { %s24_s25 = sshll.u32 %s1344_s24, 4  ;;  %s25_s25 = int_to_ptr.vmem [resolvable:$true] %s24_s25 }
   0x2   :  { %s1330_s26 = scalar_lea.vmem %s25_s25, 4096  ;;  %p1335_p1 = scmp.lt.s32.totalorder %s25_s25, %s25_s25 }
   0x3   :  { %p1331_p0 = scmp.ne.s32.totalorder %s25_s25, %s1330_s26  ;;  %p1336_p2 = scmp.lt.s32.totalorder %s1330_s26, %s1330_s26 }
   0x5   :  { %p1337_p3 = por %p1336_p2, %p1335_p1 }
   0x7   :  { %p1338_p4 = pnand %p1337_p3, %p1331_p0 }
   0x9   :  { %1341 = shalt.err (!%p1338_p4)
}
   0xa   :  { %s1345_s27 = smov 128   ;;  %s1346_s28 = smov 8  }
   0xb   :  { %30 = dma.hbm_to_vmem [thread:$0]  %s1695_s3, 4096, %s25_s25, [#allocation3], %s1345_s27, %s1345_s27, %s1346_s28  }
   0xc   :  { %1342 = dma.done.wait [#allocation3], 4096  }
   0xd   :  { %1343 = vsyncadd [#allocation3], 4294963200  ;;  %v1347_v0 = vmov 0   ;;  %v1397_v1 = vld [vmem:[%s1693_s1 + $0x14] ss:$8 sps:$4 sm:$0xff]   ;;  %vm79_vm0 = vcmask 261120   ;;  %v69_v51 = vlaneseq }
   0xe   :  { %115 = vmatprep.mubr.bf16.mxu1 %v1347_v0  ;;  %v1402_v2 = vld [vmem:[%s1693_s1 + $0x10] ss:$8 sps:$4 sm:$0xff]   ;;  %95 = vmatprep.subr.bf16.mxu1 %v1397_v1  ;;  %v1408_v3 = vld [vmem:[%s1693_s1 + $0x4] ss:$8 sps:$4 sm:$0xff]   ;;  %v1413_v4 = vld [vmem:[%s1693_s1] ss:$8 sps:$4 sm:$0xff]  }
   0xf   :  { %96 = vmatpush1.bf16.msra.mxu1 %v1402_v2  ;;  %v41_v5 = vld [vmem:[%s1692_s0] sm:$0x1]  ;;  %v1420_v6 = vld [vmem:[#allocation2 + $0x74] ss:$8 sps:$4 sm:$0xff]   ;;  %v1425_v8 = vld [vmem:[#allocation2 + $0x70] ss:$8 sps:$4 sm:$0xff]  }
  0x10   :  { %97 = vmatprep.subr.bf16.mxu1 %v1408_v3  ;;  %v1422_v7 = vpack.c.bf16 %v41_v5, %v41_v5  ;;  %v1428_v9 = vld [vmem:[#allocation2 + $0x64] ss:$8 sps:$4 sm:$0xff]   ;;  %v1433_v10 = vld [vmem:[#allocation2 + $0x60] ss:$8 sps:$4 sm:$0xff]   ;;  %v1436_v11 = vld [vmem:[#allocation2 + $0x54] ss:$8 sps:$4 sm:$0xff]  }
  0x11   :  { %v1439_v12 = vld [vmem:[#allocation2 + $0x50] ss:$8 sps:$4 sm:$0xff]   ;;  %v1442_v13 = vld [vmem:[#allocation2 + $0x44] ss:$8 sps:$4 sm:$0xff]   ;;  %v1445_v14 = vld [vmem:[#allocation2 + $0x40] ss:$8 sps:$4 sm:$0xff]  }
  0x12   :  { %v1448_v15 = vld [vmem:[#allocation2 + $0x34] ss:$8 sps:$4 sm:$0xff]   ;;  %v1450_v16 = vld [vmem:[#allocation2 + $0x30] ss:$8 sps:$4 sm:$0xff]   ;;  %v1452_v17 = vld [vmem:[#allocation2 + $0x24] ss:$8 sps:$4 sm:$0xff]  }
  0x13   :  { %98 = vmatpush1.bf16.msra.mxu1 %v1413_v4  ;;  %v1456_v18 = vld [vmem:[#allocation2 + $0x20] ss:$8 sps:$4 sm:$0xff]   ;;  %v1458_v19 = vld [vmem:[#allocation2 + $0x14] ss:$8 sps:$4 sm:$0xff]   ;;  %v1462_v20 = vld [vmem:[#allocation2 + $0x10] ss:$8 sps:$4 sm:$0xff]  }
  0x14   :  { %336 = vmatprep.subr.bf16.mxu1 %v1420_v6  ;;  %v1464_v21 = vld [vmem:[#allocation2 + $0x4] ss:$8 sps:$4 sm:$0xff]   ;;  %v1468_v22 = vld [vmem:[#allocation2] ss:$8 sps:$4 sm:$0xff]   ;;  %v1470_v23 = vld [vmem:[#allocation2 + $0xf4] ss:$8 sps:$4 sm:$0xff]  }
  0x15   :  { %v1474_v24 = vld [vmem:[#allocation2 + $0xf0] ss:$8 sps:$4 sm:$0xff]   ;;  %v1476_v25 = vld [vmem:[#allocation2 + $0xe4] ss:$8 sps:$4 sm:$0xff]   ;;  %v1480_v26 = vld [vmem:[#allocation2 + $0xe0] ss:$8 sps:$4 sm:$0xff]  }
  0x16   :  { %1084 = vmatmul.mubr.msk.bf16.vlgmr.msra.gmra.mxu1 %vm79_vm0, %v1422_v7  ;;  %v1484_v27 = vld [vmem:[#allocation2 + $0xd4] ss:$8 sps:$4 sm:$0xff]   ;;  %v1487_v28 = vld [vmem:[#allocation2 + $0xd0] ss:$8 sps:$4 sm:$0xff]   ;;  %v1490_v29 = vld [vmem:[#allocation2 + $0xc4] ss:$8 sps:$4 sm:$0xff]  }
  0x17   :  { %337 = vmatpush1.bf16.msra.mxu1 %v1425_v8  ;;  %v1493_v30 = vld [vmem:[#allocation2 + $0xc0] ss:$8 sps:$4 sm:$0xff]   ;;  %v1496_v31 = vld [vmem:[#allocation2 + $0xb4] ss:$8 sps:$4 sm:$0xff]   ;;  %v1499_v32 = vld [vmem:[#allocation2 + $0xb0] ss:$8 sps:$4 sm:$0xff]  }
  0x18   :  { %338 = vmatprep.subr.bf16.mxu1 %v1428_v9  ;;  %v1502_v33 = vld [vmem:[#allocation2 + $0xa4] ss:$8 sps:$4 sm:$0xff]   ;;  %v1505_v34 = vld [vmem:[#allocation2 + $0xa0] ss:$8 sps:$4 sm:$0xff]   ;;  %v1509_v35 = vld [vmem:[#allocation2 + $0x94] ss:$8 sps:$4 sm:$0xff]  }
  0x19   :  { %v1511_v36 = vld [vmem:[#allocation2 + $0x90] ss:$8 sps:$4 sm:$0xff]   ;;  %v1515_v37 = vld [vmem:[#allocation2 + $0x84] ss:$8 sps:$4 sm:$0xff]   ;;  %v1517_v38 = vld [vmem:[#allocation2 + $0x80] ss:$8 sps:$4 sm:$0xff]  }
  0x1a   :  { %v1290_v39 = vld [vmem:[%s1697_s5 + $0x78] sm:$0xff]   ;;  %v1292_v41 = vld [vmem:[%s1697_s5 + $0x70] sm:$0xff]   ;;  %s1348_s21 = smov 96   ;;  %v1294_v43 = vld [vmem:[%s1697_s5 + $0x68] sm:$0xff]   ;;  %v70_v52 = vshrl.u32 %v69_v51, 7  ;;  %vm554_vm5 = vcmask 516096  }
  0x1b   :  { %339 = vmatpush1.bf16.msra.mxu1 %v1433_v10  ;;  %v1291_v40 = vld [vmem:[%s1697_s5 + $0x38] sm:$0xff]   ;;  %562 = vrot.lane.b32.xlu0 %v1422_v7, %s1348_s21  ;;  %v1293_v42 = vld [vmem:[%s1697_s5 + $0x30] sm:$0xff]   ;;  %v1295_v44 = vld [vmem:[%s1697_s5 + $0x28] sm:$0xff]   ;;  %s1349_s15 = smov 64   ;;  %vm1073_vm10 = vcmask 1040896  }
  0x1c   :  { %340 = vmatprep.subr.bf16.mxu1 %v1436_v11  ;;  %1186 = vmatprep.subr.bf16.mxu0 %v1290_v39  ;;  %v1296_v45 = vld [vmem:[%s1697_s5 + $0x60] sm:$0xff]   ;;  %v1298_v47 = vld [vmem:[%s1697_s5 + $0x58] sm:$0xff]   ;;  %v1300_v49 = vld [vmem:[%s1697_s5 + $0x50] sm:$0xff]   ;;  %v1558_v53 = vsub.s32 0, %v70_v52  ;;  %v1563_v55 = vsub.s32 1, %v70_v52 }
  0x1d   :  { %1187 = vmatpush3.bf16.msra.mxu0 %v1291_v40  ;;  %v1297_v46 = vld [vmem:[%s1697_s5 + $0x20] sm:$0xff]   ;;  %v1299_v48 = vld [vmem:[%s1697_s5 + $0x18] sm:$0xff]   ;;  %v1301_v50 = vld [vmem:[%s1697_s5 + $0x10] sm:$0xff]  }
  0x1e   :  { %1188 = vmatprep.subr.bf16.mxu0 %v1292_v41  ;;  %v47_v54 = vld [vmem:[%s1694_s2] sm:$0x3] }
  0x1f   :  { %341 = vmatpush1.bf16.msra.mxu1 %v1439_v12  ;;  %v72_v56 = vrot.slane %v47_v54, %v1558_v53  ;;  %v76_v57 = vrot.slane %v47_v54, %v1563_v55 }
  0x20   :  { %342 = vmatprep.subr.bf16.mxu1 %v1442_v13 }
  0x21   :  { %1189 = vmatpush3.bf16.msra.mxu0 %v1293_v42 }
  0x22   :  { %1190 = vmatprep.subr.bf16.mxu0 %v1294_v43  ;;  %v1302_v43 = vld [vmem:[%s1697_s5 + $0x48] sm:$0xff]  }
  0x23   :  { %343 = vmatpush1.bf16.msra.mxu1 %v1445_v14 }
  0x24   :  { %344 = vmatprep.subr.bf16.mxu1 %v1448_v15 }
  0x25   :  { %1191 = vmatpush3.bf16.msra.mxu0 %v1295_v44  ;;  %v1303_v44 = vld [vmem:[%s1697_s5 + $0x8] sm:$0xff]  }
  0x26   :  { %1192 = vmatprep.subr.bf16.mxu0 %v1296_v45  ;;  %v1304_v45 = vld [vmem:[%s1697_s5 + $0x40] sm:$0xff]  }
  0x27   :  { %345 = vmatpush1.bf16.msra.mxu1 %v1450_v16 }
  0x28   :  { %346 = vmatprep.subr.bf16.mxu1 %v1452_v17 }
  0x29   :  { %1193 = vmatpush3.bf16.msra.mxu0 %v1297_v46  ;;  %v1305_v46 = vld [vmem:[%s1697_s5] sm:$0xff]  }
  0x2a   :  { %1194 = vmatprep.subr.bf16.mxu0 %v1298_v47  ;;  %v164_v47 = vld [vmem:[%s1696_s4] sm:$0x3] }
  0x2b   :  { %347 = vmatpush1.bf16.msra.mxu1 %v1456_v18 }
  0x2c   :  { %348 = vmatprep.subr.bf16.mxu1 %v1458_v19 }
  0x2d   :  { %1195 = vmatpush3.bf16.msra.mxu0 %v1299_v48  ;;  %v329_v48 = vrot.slane %v164_v47, %v1558_v53 }
  0x2e   :  { %1196 = vmatprep.subr.bf16.mxu0 %v1300_v49  ;;  %v333_v49 = vrot.slane %v164_v47, %v1563_v55 }
  0x2f   :  { %349 = vmatpush1.bf16.msra.mxu1 %v1462_v20 }
  0x30   :  { %350 = vmatprep.subr.bf16.mxu1 %v1464_v21 }
  0x31   :  { %1197 = vmatpush3.bf16.msra.mxu0 %v1301_v50 }
  0x32   :  { %1198 = vmatprep.subr.bf16.mxu0 %v1302_v43 }
  0x33   :  { %351 = vmatpush1.bf16.msra.mxu1 %v1468_v22 }
  0x34   :  { %352 = vmatprep.subr.bf16.mxu1 %v1470_v23 }
  0x35   :  { %1199 = vmatpush3.bf16.msra.mxu0 %v1303_v44 }
  0x36   :  { %1200 = vmatprep.subr.bf16.mxu0 %v1304_v45 }
  0x37   :  { %353 = vmatpush2.bf16.msra.mxu1 %v1474_v24 }
  0x38   :  { %354 = vmatprep.subr.bf16.mxu1 %v1476_v25 }
  0x39   :  { %1201 = vmatpush3.bf16.msra.mxu0 %v1305_v46 }
  0x3a   :  { %610 = vmatprep.subr.bf16.mxu0 %v1397_v1 }
  0x3b   :  { %355 = vmatpush2.bf16.msra.mxu1 %v1480_v26 }
  0x3c   :  { %356 = vmatprep.subr.bf16.mxu1 %v1484_v27 }
  0x3f   :  { %357 = vmatpush2.bf16.msra.mxu1 %v1487_v28 }
  0x40   :  { %358 = vmatprep.subr.bf16.mxu1 %v1490_v29 }
  0x43   :  { %359 = vmatpush2.bf16.msra.mxu1 %v1493_v30 }
  0x44   :  { %360 = vmatprep.subr.bf16.mxu1 %v1496_v31 }
  0x47   :  { %361 = vmatpush2.bf16.msra.mxu1 %v1499_v32 }
  0x48   :  { %362 = vmatprep.subr.bf16.mxu1 %v1502_v33 }
  0x4b   :  { %363 = vmatpush2.bf16.msra.mxu1 %v1505_v34 }
  0x4c   :  { %364 = vmatprep.subr.bf16.mxu1 %v1509_v35 }
  0x4f   :  { %365 = vmatpush2.bf16.msra.mxu1 %v1511_v36 }
  0x50   :  { %366 = vmatprep.subr.bf16.mxu1 %v1515_v37 }
  0x53   :  { %367 = vmatpush2.bf16.msra.mxu1 %v1517_v38 }
  0xd6   :  { %v117_v58 = vpop.f32.mrf.mxu1 }
  0xd7   :  { %v118_v59 = vadd.f32 %v117_v58, %v72_v56 }
  0xd8   :  { %v119_v60 = vpop.f32.mrf.mxu1 }
  0xd9   :  { %vm124_vm1 = vcmp.gt.f32.partialorder %v118_v59, 0.0  ;;  %v126_v61 = vmul.f32 0.01, %v118_v59  ;;  %v120_v62 = vadd.f32 %v119_v60, %v76_v57 }
  0xda   :  { %v121_v63 = vpop.f32.mrf.mxu1 }
  0xdb   :  { %vm125_vm2 = vcmp.gt.f32.partialorder %v120_v62, 0.0  ;;  %v127_v5 = vmul.f32 0.01, %v120_v62  ;;  %v128_v7 = vsel %vm124_vm1, %v118_v59, %v126_v61  ;;  %v563_v63 = vpop.permute.xlu0 %562 }
  0xdc   :  { %v122_v39 = vpop.f32.mrf.mxu1  ;;  %v130_v42 = vpack.c.bf16 %v128_v7, %v128_v7  ;;  %v1321_v7 = vld [vmem:[%s1697_s5] sm:$0xff]  }
  0xdd   :  { %v129_v40 = vsel %vm125_vm2, %v120_v62, %v127_v5  ;;  %v1320_v5 = vld [vmem:[%s1697_s5 + $0x40] sm:$0xff]  }
  0xde   :  { %v131_v41 = vpack.c.bf16 %v129_v40, %v129_v40  ;;  %v679_v39 = vld [vmem:[%s1696_s4] sm:$0x3] }
  0xdf   :  { %v844_v40 = vrot.slane %v679_v39, %v1558_v53 }
  0xe0   :  { %368 = vmatprep.mubr.bf16.mxu1 %v131_v41  ;;  %v848_v41 = vrot.slane %v679_v39, %v1563_v55 }
  0xe1   :  { %369 = vmatmul.mubr.bf16.vlgmr.msra.gmra.mxu1 %v130_v42 }
 0x1a1   :  { %v370_v50 = vpop.f32.mrf.mxu1 }
 0x1a2   :  { %v371_v51 = vadd.f32 %v370_v50, %v329_v48 }
 0x1a3   :  { %v372_v52 = vpop.f32.mrf.mxu1 }
 0x1a4   :  { %vm377_vm3 = vcmp.gt.f32.partialorder %v371_v51, 0.0  ;;  %v379_v54 = vmul.f32 0.01, %v371_v51  ;;  %v373_v56 = vadd.f32 %v372_v52, %v333_v49 }
 0x1a5   :  { %v374_v57 = vpop.f32.mrf.mxu1 }
 0x1a6   :  { %vm378_vm4 = vcmp.gt.f32.partialorder %v373_v56, 0.0  ;;  %v380_v58 = vmul.f32 0.01, %v373_v56  ;;  %v381_v60 = vsel %vm377_vm3, %v371_v51, %v379_v54 }
 0x1a7   :  { %v375_v59 = vpop.f32.mrf.mxu1  ;;  %v383_v62 = vpack.c.bf16 %v381_v60, %v381_v60 }
 0x1a8   :  { %v382_v1 = vsel %vm378_vm4, %v373_v56, %v380_v58 }
 0x1a9   :  { %v384_v61 = vpack.c.bf16 %v382_v1, %v382_v1 }
 0x1ab   :  { %546 = vmatprep.mubr.bf16.mxu0 %v384_v61 }
 0x1ac   :  { %547 = vmatmul.mubr.bf16.vlgmr.msra.gmra.mxu0 %v383_v62 }
 0x1ad   :  { %611 = vmatpush1.bf16.msra.mxu0 %v1402_v2  ;;  %630 = vmatprep.mubr.bf16.mxu0 %v1347_v0  ;;  %v1306_v0 = vld [vmem:[%s1697_s5 + $0x78] sm:$0xff]  }
 0x1ae   :  { %612 = vmatprep.subr.bf16.mxu0 %v1408_v3  ;;  %v1307_v2 = vld [vmem:[%s1697_s5 + $0x38] sm:$0xff]   ;;  %v1308_v3 = vld [vmem:[%s1697_s5 + $0x70] sm:$0xff]   ;;  %1208 = vmatprep.subr.bf16.mxu1 %v1306_v0 }
 0x1af   :  { %1209 = vmatpush3.bf16.msra.mxu1 %v1307_v2 }
 0x1b0   :  { %1210 = vmatprep.subr.bf16.mxu1 %v1308_v3 }
 0x1b1   :  { %613 = vmatpush1.bf16.msra.mxu0 %v1413_v4  ;;  %v1309_v4 = vld [vmem:[%s1697_s5 + $0x30] sm:$0xff]  }
 0x1b2   :  { %851 = vmatprep.subr.bf16.mxu0 %v1420_v6  ;;  %v1310_v6 = vld [vmem:[%s1697_s5 + $0x68] sm:$0xff]  }
 0x1b3   :  { %1211 = vmatpush3.bf16.msra.mxu1 %v1309_v4 }
 0x1b4   :  { %1137 = vmatmul.mubr.msk.bf16.vlgmr.msra.gmra.mxu0 %vm79_vm0, %v563_v63  ;;  %1212 = vmatprep.subr.bf16.mxu1 %v1310_v6 }
 0x1b5   :  { %852 = vmatpush1.bf16.msra.mxu0 %v1425_v8  ;;  %v1311_v8 = vld [vmem:[%s1697_s5 + $0x28] sm:$0xff]  }
 0x1b6   :  { %853 = vmatprep.subr.bf16.mxu0 %v1428_v9  ;;  %v1312_v9 = vld [vmem:[%s1697_s5 + $0x60] sm:$0xff]  }
 0x1b7   :  { %1213 = vmatpush3.bf16.msra.mxu1 %v1311_v8 }
 0x1b8   :  { %1214 = vmatprep.subr.bf16.mxu1 %v1312_v9 }
 0x1b9   :  { %854 = vmatpush1.bf16.msra.mxu0 %v1433_v10  ;;  %v1313_v10 = vld [vmem:[%s1697_s5 + $0x20] sm:$0xff]  }
 0x1ba   :  { %855 = vmatprep.subr.bf16.mxu0 %v1436_v11  ;;  %v1314_v11 = vld [vmem:[%s1697_s5 + $0x58] sm:$0xff]  }
 0x1bb   :  { %1215 = vmatpush3.bf16.msra.mxu1 %v1313_v10 }
 0x1bc   :  { %1216 = vmatprep.subr.bf16.mxu1 %v1314_v11 }
 0x1bd   :  { %856 = vmatpush1.bf16.msra.mxu0 %v1439_v12  ;;  %v1315_v12 = vld [vmem:[%s1697_s5 + $0x18] sm:$0xff]  }
 0x1be   :  { %857 = vmatprep.subr.bf16.mxu0 %v1442_v13  ;;  %v1316_v13 = vld [vmem:[%s1697_s5 + $0x50] sm:$0xff]  }
 0x1bf   :  { %1217 = vmatpush3.bf16.msra.mxu1 %v1315_v12 }
 0x1c0   :  { %1218 = vmatprep.subr.bf16.mxu1 %v1316_v13 }
 0x1c1   :  { %858 = vmatpush1.bf16.msra.mxu0 %v1445_v14 }
 0x1c2   :  { %859 = vmatprep.subr.bf16.mxu0 %v1448_v15  ;;  %v417_v15 = vld [vmem:[%s1698_s6] sm:$0x1] }
 0x1c5   :  { %860 = vmatpush1.bf16.msra.mxu0 %v1450_v16 }
 0x1c6   :  { %861 = vmatprep.subr.bf16.mxu0 %v1452_v17  ;;  %v560_v17 = vld [vmem:[%s1694_s2] sm:$0x3] }
 0x1c9   :  { %862 = vmatpush1.bf16.msra.mxu0 %v1456_v18 }
 0x1ca   :  { %863 = vmatprep.subr.bf16.mxu0 %v1458_v19 }
 0x1cd   :  { %864 = vmatpush1.bf16.msra.mxu0 %v1462_v20 }
 0x1ce   :  { %865 = vmatprep.subr.bf16.mxu0 %v1464_v21  ;;  %v588_v21 = vrot.slane %v560_v17, %v1558_v53  ;;  %v932_v53 = vld [vmem:[%s1698_s6] sm:$0x1] }
 0x1d1   :  { %866 = vmatpush1.bf16.msra.mxu0 %v1468_v22 }
 0x1d2   :  { %867 = vmatprep.subr.bf16.mxu0 %v1470_v23  ;;  %v592_v23 = vrot.slane %v560_v17, %v1563_v55 }
 0x1d5   :  { %868 = vmatpush2.bf16.msra.mxu0 %v1474_v24 }
 0x1d6   :  { %869 = vmatprep.subr.bf16.mxu0 %v1476_v25 }
 0x1d9   :  { %870 = vmatpush2.bf16.msra.mxu0 %v1480_v26 }
 0x1da   :  { %871 = vmatprep.subr.bf16.mxu0 %v1484_v27 }
 0x1dd   :  { %872 = vmatpush2.bf16.msra.mxu0 %v1487_v28 }
 0x1de   :  { %873 = vmatprep.subr.bf16.mxu0 %v1490_v29 }
 0x1e1   :  { %874 = vmatpush2.bf16.msra.mxu0 %v1493_v30 }
 0x1e2   :  { %875 = vmatprep.subr.bf16.mxu0 %v1496_v31 }
 0x1e5   :  { %876 = vmatpush2.bf16.msra.mxu0 %v1499_v32 }
 0x1e6   :  { %877 = vmatprep.subr.bf16.mxu0 %v1502_v33 }
 0x1e9   :  { %878 = vmatpush2.bf16.msra.mxu0 %v1505_v34 }
 0x1ea   :  { %879 = vmatprep.subr.bf16.mxu0 %v1509_v35 }
 0x1ed   :  { %880 = vmatpush2.bf16.msra.mxu0 %v1511_v36  ;;  %v1317_v36 = vld [vmem:[%s1697_s5 + $0x10] sm:$0xff]  }
 0x1ee   :  { %881 = vmatprep.subr.bf16.mxu0 %v1515_v37  ;;  %1219 = vmatpush3.bf16.msra.mxu1 %v1317_v36  ;;  %v1318_v37 = vld [vmem:[%s1697_s5 + $0x48] sm:$0xff]  }
 0x1ef   :  { %1220 = vmatprep.subr.bf16.mxu1 %v1318_v37 }
 0x1f1   :  { %882 = vmatpush2.bf16.msra.mxu0 %v1517_v38  ;;  %v1319_v38 = vld [vmem:[%s1697_s5 + $0x8] sm:$0xff]  }
 0x1f2   :  { %1221 = vmatpush3.bf16.msra.mxu1 %v1319_v38 }
 0x1f3   :  { %1222 = vmatprep.subr.bf16.mxu1 %v1320_v5 }
 0x1f6   :  { %1223 = vmatpush3.bf16.msra.mxu1 %v1321_v7 }
 0x26c   :  { %v1202_v14 = vpop.f32.mrf.mxu0 }
 0x26e   :  { %v1203_v16 = vpop.f32.mrf.mxu0 }
 0x26f   :  { %v1204_v18 = vadd.f32 %v1203_v16, %v1202_v14 }
 0x270   :  { %v1205_v19 = vpop.f32.mrf.mxu0 }
 0x271   :  { %v549_v20 = vadd.f32 %v1204_v18, %v417_v15 }
 0x272   :  { %v1206_v22 = vpop.f32.mrf.mxu0 }
 0x273   :  { %555 = vst.msk [vmem:[%s1699_s7] sm:$0x1] %vm554_vm5, %v549_v20 }
 0x274   :  { %v632_v24 = vpop.f32.mrf.mxu0 }
 0x275   :  { %v633_v25 = vadd.f32 %v632_v24, %v588_v21 }
 0x276   :  { %v634_v26 = vpop.f32.mrf.mxu0 }
 0x277   :  { %vm639_vm6 = vcmp.gt.f32.partialorder %v633_v25, 0.0  ;;  %v641_v27 = vmul.f32 0.01, %v633_v25  ;;  %v635_v28 = vadd.f32 %v634_v26, %v592_v23 }
 0x278   :  { %v636_v29 = vpop.f32.mrf.mxu0 }
 0x279   :  { %vm640_vm7 = vcmp.gt.f32.partialorder %v635_v28, 0.0  ;;  %v642_v30 = vmul.f32 0.01, %v635_v28  ;;  %v643_v31 = vsel %vm639_vm6, %v633_v25, %v641_v27 }
 0x27a   :  { %v637_v32 = vpop.f32.mrf.mxu0  ;;  %v645_v35 = vpack.c.bf16 %v643_v31, %v643_v31 }
 0x27b   :  { %v644_v33 = vsel %vm640_vm7, %v635_v28, %v642_v30 }
 0x27c   :  { %v646_v34 = vpack.c.bf16 %v644_v33, %v644_v33 }
 0x27e   :  { %883 = vmatprep.mubr.bf16.mxu0 %v646_v34 }
 0x27f   :  { %884 = vmatmul.mubr.bf16.vlgmr.msra.gmra.mxu0 %v645_v35 }
 0x33f   :  { %v885_v42 = vpop.f32.mrf.mxu0 }
 0x340   :  { %v886_v43 = vadd.f32 %v885_v42, %v844_v40 }
 0x341   :  { %v887_v44 = vpop.f32.mrf.mxu0 }
 0x342   :  { %vm892_vm8 = vcmp.gt.f32.partialorder %v886_v43, 0.0  ;;  %v894_v45 = vmul.f32 0.01, %v886_v43  ;;  %v888_v46 = vadd.f32 %v887_v44, %v848_v41 }
 0x343   :  { %v889_v47 = vpop.f32.mrf.mxu0 }
 0x344   :  { %vm893_vm9 = vcmp.gt.f32.partialorder %v888_v46, 0.0  ;;  %v895_v48 = vmul.f32 0.01, %v888_v46  ;;  %v896_v49 = vsel %vm892_vm8, %v886_v43, %v894_v45 }
 0x345   :  { %v890_v50 = vpop.f32.mrf.mxu0  ;;  %v898_v54 = vpack.c.bf16 %v896_v49, %v896_v49 }
 0x346   :  { %v897_v51 = vsel %vm893_vm9, %v888_v46, %v895_v48 }
 0x347   :  { %v899_v52 = vpack.c.bf16 %v897_v51, %v897_v51 }
 0x349   :  { %1061 = vmatprep.mubr.bf16.mxu1 %v899_v52 }
 0x34a   :  { %1062 = vmatmul.mubr.bf16.vlgmr.msra.gmra.mxu1 %v898_v54 }
 0x40a   :  { %v1224_v56 = vpop.f32.mrf.mxu1 }
 0x40c   :  { %v1225_v55 = vpop.f32.mrf.mxu1 }
 0x40d   :  { %v1226_v57 = vadd.f32 %v1225_v55, %v1224_v56 }
 0x40e   :  { %v1227_v58 = vpop.f32.mrf.mxu1 }
 0x40f   :  { %v1064_v59 = vadd.f32 %v1226_v57, %v932_v53 }
 0x410   :  { %v1228_v60 = vpop.f32.mrf.mxu1 }
 0x411   :  { %1070 = vrot.lane.b32.xlu0 %v1064_v59, %s1349_s15 }
 0x483   :  { %v1071_v1 = vpop.permute.xlu0 %1070 }
 0x484   :  { %1074 = vst.msk [vmem:[%s1699_s7] sm:$0x1] %vm1073_vm10, %v1071_v1 }
 0x485   :  { %1079 = vsyncpa [#allocation3], 1 }

</bundles_post_ra>
